<compile_context>
chip_gen: v5e
topology: v5e:2x2
jax: 0.10.0
libtpu: 0.0.40
codegen_flags: <defaults>
</compile_context>

<pallas_src>
import jax
import jax.numpy as jnp
from jax.experimental import pallas as pl
from jax.experimental.pallas import tpu as pltpu


def _round_up(n, m):
    return ((n + m - 1) // m) * m


# ---------------------------------------------------------------------------
# Kernel body: fused 3-layer MLP on one (TILE_B, in) tile.  Works for both the
# single-network and the population-fused call (leading P dim is squeezed).
# ---------------------------------------------------------------------------
def _mlp_kernel(x_ref, w1_ref, b1_ref, w2_ref, b2_ref, w3_ref, b3_ref, out_ref):
    # torch `.float()`: cast the (possibly narrow-dtype) observation tile to f32.
    x = x_ref[...].astype(jnp.float32)

    h1 = jnp.dot(x, w1_ref[...], preferred_element_type=jnp.float32) + b1_ref[...]
    h1 = jnp.maximum(h1, 0.0)

    h2 = jnp.dot(h1, w2_ref[...], preferred_element_type=jnp.float32) + b2_ref[...]
    h2 = jnp.maximum(h2, 0.0)

    out_ref[...] = (
        jnp.dot(h2, w3_ref[...], preferred_element_type=jnp.float32) + b3_ref[...]
    )


# ---------------------------------------------------------------------------
# Parameter handling (torch convention <-> kernel layout).  Layout conversion
# is done ONCE here, not on every forward.
# ---------------------------------------------------------------------------
def init_params(key, input_shape, n_actions):
    """Deterministic init matching the torch parameter shapes (torch convention)."""
    ks = jax.random.split(key, 6)

    def u(k, shape, fan_in):
        bound = 1.0 / jnp.sqrt(fan_in)
        return jax.random.uniform(k, shape, jnp.float32, -bound, bound)

    return {
        "w1": u(ks[0], (32, input_shape), input_shape),
        "b1": u(ks[1], (32,), input_shape),
        "w2": u(ks[2], (32, 32), 32),
        "b2": u(ks[3], (32,), 32),
        "w3": u(ks[4], (n_actions, 32), 32),
        "b3": u(ks[5], (n_actions,), 32),
    }


def prepare_params(torch_params):
    """One-time conversion to kernel layout: weights -> (in, out), biases -> (1, out).

    Call this at init / after each CMA parameter update, NOT per forward.
    """
    return {
        "w1": jnp.asarray(torch_params["w1"]).T,
        "b1": jnp.asarray(torch_params["b1"]).reshape(1, -1),
        "w2": jnp.asarray(torch_params["w2"]).T,
        "b2": jnp.asarray(torch_params["b2"]).reshape(1, -1),
        "w3": jnp.asarray(torch_params["w3"]).T,
        "b3": jnp.asarray(torch_params["b3"]).reshape(1, -1),
    }


def stack_prepared(prep_list):
    """Stack P prepared parameter sets into (P, ...) arrays for the fused call."""
    return {k: jnp.stack([p[k] for p in prep_list]) for k in prep_list[0]}


# ---------------------------------------------------------------------------
# Single-network forward with a batch grid.
# ---------------------------------------------------------------------------
def mlp_forward(x, prep, *, tile_b=512):
    """x: (B, input_shape); prep: output of prepare_params. Returns (B, n_actions) f32.

    tile_b: batch tile size. 512 amortizes per-step overhead well; the working
    set per step (~4 lane-padded tiles) stays far below VMEM limits on
    v5e/v6e/v7x.  For CMA-sized tiny batches the tile shrinks to the batch.
    """
    B, in_dim = x.shape
    n_actions = prep["w3"].shape[1]

    # Tile must be a multiple of 8 (sublane) unless it equals the full dim.
    tb = _round_up(min(tile_b, _round_up(B, 8)), 8)
    Bp = _round_up(B, tb)
    if Bp != B:
        x = jnp.pad(x, ((0, Bp - B), (0, 0)))  # padded rows are dropped below

    grid = (Bp // tb,)

    def streamed(shape):
        return pl.BlockSpec(shape, lambda i: (i, 0), memory_space=pltpu.VMEM)

    def resident(a):
        # Constant index_map -> Pallas keeps the operand in VMEM across steps.
        return pl.BlockSpec(a.shape, lambda i: (0, 0), memory_space=pltpu.VMEM)

    out = pl.pallas_call(
        _mlp_kernel,
        grid=grid,
        out_shape=jax.ShapeDtypeStruct((Bp, n_actions), jnp.float32),
        in_specs=[
            streamed((tb, in_dim)),
            resident(prep["w1"]), resident(prep["b1"]),
            resident(prep["w2"]), resident(prep["b2"]),
            resident(prep["w3"]), resident(prep["b3"]),
        ],
        out_specs=streamed((tb, n_actions)),
        compiler_params=pltpu.CompilerParams(
            dimension_semantics=("parallel",),      # v7x: shard batch over 2 TCs
            vmem_limit_bytes=32 * 1024 * 1024,
        ),
    )(x, prep["w1"], prep["b1"], prep["w2"], prep["b2"], prep["w3"], prep["b3"])

    return out[:B]


# ---------------------------------------------------------------------------
# CMA-ES population forward: P candidate networks, ONE pallas_call.
#   x: (P, B, input_shape) — each candidate's own observation batch.
#   prep_pop: stacked prepared params, weights (P, in, out), biases (P, 1, out).
# ---------------------------------------------------------------------------
def mlp_forward_population(x, prep_pop, *, tile_b=512):
    P, B, in_dim = x.shape
    n_actions = prep_pop["w3"].shape[-1]

    tb = _round_up(min(tile_b, _round_up(B, 8)), 8)
    Bp = _round_up(B, tb)
    if Bp != B:
        x = jnp.pad(x, ((0, 0), (0, Bp - B), (0, 0)))

    grid = (P, Bp // tb)

    def per_candidate(a):
        # Leading population dim is squeezed out of the kernel view; the
        # candidate's weights are selected by the p grid axis.
        return pl.BlockSpec((None,) + a.shape[1:], lambda p, i: (p, 0, 0),
                            memory_space=pltpu.VMEM)

    out = pl.pallas_call(
        _mlp_kernel,
        grid=grid,
        out_shape=jax.ShapeDtypeStruct((P, Bp, n_actions), jnp.float32),
        in_specs=[
            pl.BlockSpec((None, tb, in_dim), lambda p, i: (p, i, 0),
                         memory_space=pltpu.VMEM),
            per_candidate(prep_pop["w1"]), per_candidate(prep_pop["b1"]),
            per_candidate(prep_pop["w2"]), per_candidate(prep_pop["b2"]),
            per_candidate(prep_pop["w3"]), per_candidate(prep_pop["b3"]),
        ],
        out_specs=pl.BlockSpec((None, tb, n_actions), lambda p, i: (p, i, 0),
                               memory_space=pltpu.VMEM),
        compiler_params=pltpu.CompilerParams(
            dimension_semantics=("parallel", "parallel"),
            vmem_limit_bytes=32 * 1024 * 1024,
        ),
    )(x, prep_pop["w1"], prep_pop["b1"], prep_pop["w2"], prep_pop["b2"],
      prep_pop["w3"], prep_pop["b3"])

    return out[:, :B]


# ---------------------------------------------------------------------------
# Pure-JAX reference (torch-convention params) for correctness checks.
# ---------------------------------------------------------------------------
def _reference(x, p):
    h1 = jnp.maximum(x.astype(jnp.float32) @ p["w1"].T + p["b1"], 0.0)
    h2 = jnp.maximum(h1 @ p["w2"].T + p["b2"], 0.0)
    return h2 @ p["w3"].T + p["b3"]


if __name__ == "__main__":
    key = jax.random.PRNGKey(0)
    k_x, k_p, k_x2, k_xp, k_pp = jax.random.split(key, 5)

    input_shape, n_actions = 16, 4

    torch_params = init_params(k_p, input_shape, n_actions)
    prep = prepare_params(torch_params)   # layout conversion done ONCE

    # 1) tiny batch (single grid step, tile shrinks to 8)
    x_small = jax.random.normal(k_x, (8, input_shape), jnp.float32)
    out_small = jax.block_until_ready(mlp_forward(x_small, prep))
    ref_small = _reference(x_small, torch_params)
    assert out_small.shape == (8, n_actions)
    assert jnp.allclose(out_small, ref_small, atol=1e-5, rtol=1e-5), "small-batch mismatch"

    # 2) batch not divisible by the tile -> grid of 3 with a padded tail tile
    x_big = jax.random.normal(k_x2, (300, input_shape), jnp.float32)
    out_big = jax.block_until_ready(mlp_forward(x_big, prep, tile_b=128))
    ref_big = _reference(x_big, torch_params)
    assert out_big.shape == (300, n_actions)
    assert jnp.allclose(out_big, ref_big, atol=1e-5, rtol=1e-5), "tiled-batch mismatch"

    # 3) CMA-ES population: P candidate networks fused into ONE launch
    P, B = 3, 16
    pop_keys = jax.random.split(k_pp, P)
    torch_pop = [init_params(k, input_shape, n_actions) for k in pop_keys]
    prep_pop = stack_prepared([prepare_params(tp) for tp in torch_pop])
    x_pop = jax.random.normal(k_xp, (P, B, input_shape), jnp.float32)
    out_pop = jax.block_until_ready(mlp_forward_population(x_pop, prep_pop, tile_b=16))
    ref_pop = jnp.stack([_reference(x_pop[p], torch_pop[p]) for p in range(P)])
    assert out_pop.shape == (P, B, n_actions)
    assert jnp.allclose(out_pop, ref_pop, atol=1e-5, rtol=1e-5), "population mismatch"

    # TODO(synk): get_params/set_params (flat CMA parameter vector <-> module) are
    # host-side numpy utilities with no kernel equivalent; not translated.
    print("KERNEL_OK")
</pallas_src>

<mosaic_0001>
module attributes {stable_mosaic.version = 11 : i64} {
  func.func @_mlp_kernel(%arg0: i32, %arg1: memref<8x16xf32, #tpu.memory_space<vmem>>, %arg2: memref<16x32xf32, #tpu.memory_space<vmem>>, %arg3: memref<1x32xf32, #tpu.memory_space<vmem>>, %arg4: memref<32x32xf32, #tpu.memory_space<vmem>>, %arg5: memref<1x32xf32, #tpu.memory_space<vmem>>, %arg6: memref<32x4xf32, #tpu.memory_space<vmem>>, %arg7: memref<1x4xf32, #tpu.memory_space<vmem>>, %arg8: memref<8x4xf32, #tpu.memory_space<vmem>>) attributes {dimension_semantics = [#tpu.dimension_semantics<parallel>], iteration_bounds = array<i64: 1>, scalar_prefetch = 0 : i64, scratch_operands = 0 : i64, tpu.core_type = #tpu.core_type<tc>, window_params = [{transform_indices = @transform_0, window_bounds = array<i64: 8, 16>}, {pipeline_mode = #tpu.pipeline_mode<synchronous>, transform_indices = @transform_1, window_bounds = array<i64: 16, 32>}, {pipeline_mode = #tpu.pipeline_mode<synchronous>, transform_indices = @transform_2, window_bounds = array<i64: 1, 32>}, {pipeline_mode = #tpu.pipeline_mode<synchronous>, transform_indices = @transform_3, window_bounds = array<i64: 32, 32>}, {pipeline_mode = #tpu.pipeline_mode<synchronous>, transform_indices = @transform_4, window_bounds = array<i64: 1, 32>}, {pipeline_mode = #tpu.pipeline_mode<synchronous>, transform_indices = @transform_5, window_bounds = array<i64: 32, 4>}, {pipeline_mode = #tpu.pipeline_mode<synchronous>, transform_indices = @transform_6, window_bounds = array<i64: 1, 4>}, {transform_indices = @transform_7, window_bounds = array<i64: 8, 4>}]} {
    %c0 = arith.constant 0 : index
    %c0_0 = arith.constant 0 : index
    %0 = vector.load %arg1[%c0, %c0_0] : memref<8x16xf32, #tpu.memory_space<vmem>>, vector<8x16xf32>
    %c0_1 = arith.constant 0 : index
    %c0_2 = arith.constant 0 : index
    %1 = vector.load %arg2[%c0_1, %c0_2] : memref<16x32xf32, #tpu.memory_space<vmem>>, vector<16x32xf32>
    %cst = arith.constant dense<0.000000e+00> : vector<8x32xf32>
    %2 = tpu.matmul %0, %1, %cst {dimension_numbers = #tpu.dot_dimension_numbers<[1], [0], [0], [1], [0, 0, 1, 1], [], []>} : vector<8x16xf32>, vector<16x32xf32>, vector<8x32xf32> -> vector<8x32xf32>
    %c0_3 = arith.constant 0 : index
    %c0_4 = arith.constant 0 : index
    %3 = vector.load %arg3[%c0_3, %c0_4] : memref<1x32xf32, #tpu.memory_space<vmem>>, vector<1x32xf32>
    %4 = vector.broadcast %3 : vector<1x32xf32> to vector<8x32xf32>
    %5 = arith.addf %2, %4 : vector<8x32xf32>
    %cst_5 = arith.constant 0.000000e+00 : f32
    %6 = vector.broadcast %cst_5 : f32 to vector<8x32xf32>
    %7 = arith.maximumf %5, %6 : vector<8x32xf32>
    %c0_6 = arith.constant 0 : index
    %c0_7 = arith.constant 0 : index
    %8 = vector.load %arg4[%c0_6, %c0_7] : memref<32x32xf32, #tpu.memory_space<vmem>>, vector<32x32xf32>
    %cst_8 = arith.constant dense<0.000000e+00> : vector<8x32xf32>
    %9 = tpu.matmul %7, %8, %cst_8 {dimension_numbers = #tpu.dot_dimension_numbers<[1], [0], [0], [1], [0, 0, 1, 1], [], []>} : vector<8x32xf32>, vector<32x32xf32>, vector<8x32xf32> -> vector<8x32xf32>
    %c0_9 = arith.constant 0 : index
    %c0_10 = arith.constant 0 : index
    %10 = vector.load %arg5[%c0_9, %c0_10] : memref<1x32xf32, #tpu.memory_space<vmem>>, vector<1x32xf32>
    %11 = vector.broadcast %10 : vector<1x32xf32> to vector<8x32xf32>
    %12 = arith.addf %9, %11 : vector<8x32xf32>
    %cst_11 = arith.constant 0.000000e+00 : f32
    %13 = vector.broadcast %cst_11 : f32 to vector<8x32xf32>
    %14 = arith.maximumf %12, %13 : vector<8x32xf32>
    %c0_12 = arith.constant 0 : index
    %c0_13 = arith.constant 0 : index
    %15 = vector.load %arg6[%c0_12, %c0_13] : memref<32x4xf32, #tpu.memory_space<vmem>>, vector<32x4xf32>
    %cst_14 = arith.constant dense<0.000000e+00> : vector<8x4xf32>
    %16 = tpu.matmul %14, %15, %cst_14 {dimension_numbers = #tpu.dot_dimension_numbers<[1], [0], [0], [1], [0, 0, 1, 1], [], []>} : vector<8x32xf32>, vector<32x4xf32>, vector<8x4xf32> -> vector<8x4xf32>
    %c0_15 = arith.constant 0 : index
    %c0_16 = arith.constant 0 : index
    %17 = vector.load %arg7[%c0_15, %c0_16] : memref<1x4xf32, #tpu.memory_space<vmem>>, vector<1x4xf32>
    %18 = vector.broadcast %17 : vector<1x4xf32> to vector<8x4xf32>
    %19 = arith.addf %16, %18 : vector<8x4xf32>
    %c0_17 = arith.constant 0 : index
    %c0_18 = arith.constant 0 : index
    %20 = vector.load %arg8[%c0_17, %c0_18] : memref<8x4xf32, #tpu.memory_space<vmem>>, vector<8x4xf32>
    tpu.vector_store %arg8[%c0_17, %c0_18], %19 {strides = array<i32>} : memref<8x4xf32, #tpu.memory_space<vmem>>, vector<8x4xf32>,
    return
  }
  func.func @transform_0(%arg0: i32) -> (i32, i32) {
    %c0_i32 = arith.constant 0 : i32
    %c0_i32_0 = arith.constant 0 : i32
    return %arg0, %c0_i32 : i32, i32
  }
  func.func @transform_1(%arg0: i32) -> (i32, i32) {
    %c0_i32 = arith.constant 0 : i32
    %c0_i32_0 = arith.constant 0 : i32
    %c0_i32_1 = arith.constant 0 : i32
    return %c0_i32, %c0_i32_0 : i32, i32
  }
  func.func @transform_2(%arg0: i32) -> (i32, i32) {
    %c0_i32 = arith.constant 0 : i32
    %c0_i32_0 = arith.constant 0 : i32
    %c0_i32_1 = arith.constant 0 : i32
    return %c0_i32, %c0_i32_0 : i32, i32
  }
  func.func @transform_3(%arg0: i32) -> (i32, i32) {
    %c0_i32 = arith.constant 0 : i32
    %c0_i32_0 = arith.constant 0 : i32
    %c0_i32_1 = arith.constant 0 : i32
    return %c0_i32, %c0_i32_0 : i32, i32
  }
  func.func @transform_4(%arg0: i32) -> (i32, i32) {
    %c0_i32 = arith.constant 0 : i32
    %c0_i32_0 = arith.constant 0 : i32
    %c0_i32_1 = arith.constant 0 : i32
    return %c0_i32, %c0_i32_0 : i32, i32
  }
  func.func @transform_5(%arg0: i32) -> (i32, i32) {
    %c0_i32 = arith.constant 0 : i32
    %c0_i32_0 = arith.constant 0 : i32
    %c0_i32_1 = arith.constant 0 : i32
    return %c0_i32, %c0_i32_0 : i32, i32
  }
  func.func @transform_6(%arg0: i32) -> (i32, i32) {
    %c0_i32 = arith.constant 0 : i32
    %c0_i32_0 = arith.constant 0 : i32
    %c0_i32_1 = arith.constant 0 : i32
    return %c0_i32, %c0_i32_0 : i32, i32
  }
  func.func @transform_7(%arg0: i32) -> (i32, i32) {
    %c0_i32 = arith.constant 0 : i32
    %c0_i32_0 = arith.constant 0 : i32
    return %arg0, %c0_i32 : i32, i32
  }
}

</mosaic_0001>

<bundles_post_ra>
// kernel: tpu_custom_call.1
= control target key start
LH: loop header
LB: loop body
LE: loop exit
PB: predicated region body
PF: predicated region fallthrough
CT: control target
= control target key end

     0   :  { %12 = vsyncpa [#allocation3], 0  ;;  %s308_s0 = inlined_call_operand.hbm [shape: f32[8,16], index: 0, kind: input, shape index: {}]   ;;  %s309_s1 = inlined_call_operand.hbm [shape: f32[16,32], index: 1, kind: input, shape index: {}]   ;;  %s310_s2 = inlined_call_operand.vmem [shape: f32[1,32], index: 2, kind: input, shape index: {}]   ;;  %s311_s3 = inlined_call_operand.vmem [shape: f32[32,32], index: 3, kind: input, shape index: {}]   ;;  %s312_s4 = inlined_call_operand.vmem [shape: f32[1,32], index: 4, kind: input, shape index: {}]   ;;  %s313_s5 = inlined_call_operand.vmem [shape: f32[32,4], index: 5, kind: input, shape index: {}]   ;;  %s314_s6 = inlined_call_operand.vmem [shape: f32[1,4], index: 6, kind: input, shape index: {}]   ;;  %s315_s7 = inlined_call_operand.vmem [shape: f32[8,4], index: 7, kind: output, shape index: {}]  }
   0x1   :  { %s19_s26 = sshll.u32 %s308_s0, 4  ;;  %s20_s26 = int_to_ptr.hbm [resolvable:$true] %s19_s26 }
   0x2   :  { %13 = vsyncpa [#allocation5], 0  ;;  %s222_s27 = smov [#allocation2]   ;;  %s29_s8 = sshll.u32 %s309_s1, 4  ;;  %s30_s8 = int_to_ptr.hbm [resolvable:$true] %s29_s8 }
   0x3   :  { %s21_s28 = sshll.u32 %s222_s27, 4  ;;  %s223_s9 = smov [#allocation4]   ;;  %s22_s28 = int_to_ptr.vmem [resolvable:$true] %s21_s28 }
   0x4   :  { %24 = dma.hbm_to_vmem [thread:$0]  %s20_s26, 128, %s22_s28, [#allocation3]  }
   0x5   :  { %s31_s10 = sshll.u32 %s223_s9, 4  ;;  %s224_s11 = smov 128   ;;  %s32_s10 = int_to_ptr.vmem [resolvable:$true] %s31_s10 }
   0x6   :  { %s225_s12 = smov 8  }
   0x7   :  { %37 = dma.hbm_to_vmem [thread:$0]  %s30_s8, 256, %s32_s10, [#allocation5], %s224_s11, %s224_s11, %s225_s12  }
   0x8   :  { %218 = dma.done.wait [#allocation3], 128  }
   0x9   :  { %219 = vsyncadd [#allocation3], 4294967168 }
   0xa   :  { %220 = dma.done.wait [#allocation5], 256  }
   0xb   :  { %221 = vsyncadd [#allocation5], 4294967040  ;;  %v58_v0 = vld [vmem:[#allocation4 + $0x8] sm:$0xff]  ;;  %v57_v1 = vld [vmem:[#allocation4] sm:$0xff]  ;;  %vm63_vm0 = vcmask 130048   ;;  %vm96_vm1 = vcmask 261120  }
   0xc   :  { %81 = vmatpush.msra.mxu0 %v58_v0  ;;  %v56_v2 = vld [vmem:[#allocation2] sm:$0xff]  ;;  %v91_v3 = vld [vmem:[%s311_s3 + $0x18] sm:$0xff]  ;;  %v90_v4 = vld [vmem:[%s311_s3 + $0x10] sm:$0xff]  ;;  %vm152_vm2 = vcmask 31744  }
   0xd   :  { %112 = vmatpush.msra.mxu1 %v91_v3  ;;  %v89_v5 = vld [vmem:[%s311_s3 + $0x8] sm:$0xff]  ;;  %v88_v6 = vld [vmem:[%s311_s3] sm:$0xff]  ;;  %v124_v7 = vld [vmem:[%s313_s5 + $0x18] sm:$0xff] }
   0xe   :  { %82 = vmatpush.msra.mxu0 %v57_v1  ;;  %144 = vmatpush.msra.mxu2 %v124_v7  ;;  %v167_v8 = vld [vmem:[%s310_s2] ss:$0 sm:$0xff]  ;;  %v123_v12 = vld [vmem:[%s313_s5 + $0x10] sm:$0xff]  ;;  %v122_v13 = vld [vmem:[%s313_s5 + $0x8] sm:$0xff] }
   0xf   :  { %160 = vmatmul.msk.f32.vlgmr.msra.gmra.mxu0 %vm63_vm0, %v56_v2  ;;  %113 = vmatpush.msra.mxu1 %v90_v4  ;;  %v121_v14 = vld [vmem:[%s313_s5] sm:$0xff] }
  0x10   :  { %145 = vmatpush.msra.mxu2 %v123_v12  ;;  %v168_v15 = vld [vmem:[%s312_s4] ss:$0 sm:$0xff] }
  0x11   :  { %114 = vmatpush.msra.mxu1 %v89_v5  ;;  %v169_v19 = vld [vmem:[%s314_s6] ss:$0 sm:$0xff] }
  0x12   :  { %146 = vmatpush.msra.mxu2 %v122_v13 }
  0x13   :  { %115 = vmatpush.msra.mxu1 %v88_v6 }
  0x14   :  { %147 = vmatpush.msra.mxu2 %v121_v14 }
  0x8c   :  { %v84_v9 = vpop.f32.mrf.mxu0 }
  0x8d   :  { %v85_v10 = vadd.f32 %v167_v8, %v84_v9 }
  0x8f   :  { %v87_v11 = vmax.f32 %v85_v10, 0.0 }
  0x91   :  { %161 = vmatmul.msk.f32.vlgmr.msra.gmra.mxu1 %vm96_vm1, %v87_v11 }
 0x10e   :  { %v117_v16 = vpop.f32.mrf.mxu1 }
 0x10f   :  { %v118_v17 = vadd.f32 %v168_v15, %v117_v16 }
 0x111   :  { %v120_v18 = vmax.f32 %v118_v17, 0.0 }
 0x113   :  { %162 = vmatmul.msk.f32.vlgmr.msra.gmra.mxu2 %vm96_vm1, %v120_v18 }
 0x196   :  { %v149_v20 = vpop.f32.mrf.mxu2 }
 0x197   :  { %v150_v21 = vadd.f32 %v169_v19, %v149_v20 }
 0x199   :  { %153 = vst.msk [vmem:[%s315_s7] sm:$0xff] %vm152_vm2, %v150_v21 }
 0x19a   :  { %158 = vsyncpa [#allocation3], 1 }
 0x19b   :  { %159 = vsyncpa [#allocation5], 1 }

</bundles_post_ra>
